<compile_context>
chip_gen: v7x
topology: tpu7x:2x2x1
jax: 0.10.0
libtpu: 0.0.40
codegen_flags: <defaults>
</compile_context>

<pallas_src>
import functools

import jax
import jax.numpy as jnp
from jax import lax
from jax.experimental import pallas as pl
from jax.experimental.pallas import tpu as pltpu


_PACKED_NAMES = ("w1", "b1", "w2", "b2", "w3", "b3",
                 "wp1a", "wp1b", "bp1", "wp2", "bp2", "wh", "bh")


def _ceil_to(x, m):
    return ((x + m - 1) // m) * m


def _rssm_encoder_kernel(
    latent_dim,                                  # static (closure via partial)
    obs_ref, h_ref,
    w1_ref, b1_ref, w2_ref, b2_ref, w3_ref, b3_ref,   # obs_encoder
    wp1a_ref, wp1b_ref, bp1_ref, wp2_ref, bp2_ref,     # posterior_net
    wh_ref, bh_ref,                                    # fused heads [Hp, 2Lp]
    out_ref,                                           # packed [tb, 2Lp] f32
):
    f32 = jnp.float32
    mm_dtype = w1_ref.dtype   # bf16 (or f32 if caller kept f32 weights)

    def mm(x, w_ref):
        # bf16 MXU matmul with f32 accumulation; bias/activations stay f32.
        return jnp.dot(x.astype(mm_dtype), w_ref[...], preferred_element_type=f32)

    obs = obs_ref[...].astype(f32)
    h = h_ref[...].astype(f32)

    # ---- obs_encoder: Linear -> ReLU -> Linear -> ReLU -> Linear ----
    x = jnp.maximum(mm(obs, w1_ref) + b1_ref[...], 0.0)
    x = jnp.maximum(mm(x, w2_ref) + b2_ref[...], 0.0)
    obs_encoded = mm(x, w3_ref) + b3_ref[...]

    # ---- posterior_net on concat([obs_encoded, h]) without the concat:
    #      two K=H dots + a (free filler) VPU add ----
    p = jnp.maximum(mm(obs_encoded, wp1a_ref) + mm(h, wp1b_ref) + bp1_ref[...], 0.0)
    p = jnp.maximum(mm(p, wp2_ref) + bp2_ref[...], 0.0)

    # ---- fused mean/std heads: one [Hp, 2Lp] matmul; select with a lane mask
    #      (no slices / concat -> no XLU relayouts on the hot path) ----
    heads = mm(p, wh_ref) + bh_ref[...]
    col = lax.broadcasted_iota(jnp.int32, heads.shape, 1)
    # numerically-stable softplus: max(x,0) + log1p(exp(-|x|))
    softplus = jnp.maximum(heads, 0.0) + jnp.log1p(jnp.exp(-jnp.abs(heads))) + 1e-05
    out_ref[...] = jnp.where(col < latent_dim, heads, softplus).astype(out_ref.dtype)


@functools.partial(jax.jit, static_argnames=("latent_dim", "batch_tile"))
def rssm_encoder_forward(obs, h_t, params, latent_dim, batch_tile=512):
    """Full RSSMEncoder forward in one pallas_call.

    obs: [B, obs_dim] f32, h_t: [B, hidden_dim] f32, params: pack_params(...)
    returns (posterior_mean [B, L], posterior_std [B, L]) in f32.
    """
    B, obs_dim = obs.shape
    H = h_t.shape[1]
    Dp = params["w1"].shape[0]        # padded obs feature dim  (mult of 128)
    Hp = params["w2"].shape[0]        # padded hidden dim       (mult of 128)
    two_Lp = params["wh"].shape[1]    # padded 2*latent dim     (mult of 128)

    # Lane-dense feature padding (zero columns are exact no-ops through
    # Linear+ReLU since the padded weight rows/cols and biases are zero).
    if Dp != obs_dim:
        obs = jnp.pad(obs, ((0, 0), (0, Dp - obs_dim)))
    if Hp != H:
        h_t = jnp.pad(h_t, ((0, 0), (0, Hp - H)))

    # Batch tile: multiple of 8, <= batch_tile.  Small batches -> one grid
    # step; a large batch that would fit one tile is split into >=2 tiles so
    # the "parallel" axis can feed both v7x TensorCores.
    b8 = _ceil_to(B, 8)
    tb = min(batch_tile, b8)
    if tb == b8 and tb > 256:
        tb = _ceil_to((tb + 1) // 2, 8)
    Bp = _ceil_to(B, tb)
    if Bp != B:
        obs = jnp.pad(obs, ((0, Bp - B), (0, 0)))
        h_t = jnp.pad(h_t, ((0, Bp - B), (0, 0)))
    nb = Bp // tb

    # Batch-tiled inputs step along the grid; params use a constant block
    # index so they remain VMEM-resident across all grid iterations.
    # TODO(synk): for very large H on v7x, add pipeline_mode=pl.Buffered(1) to
    # these grid-invariant param specs to drop their second pipeline buffer.
    in_specs = [
        pl.BlockSpec((tb, Dp), lambda i: (i, 0)),
        pl.BlockSpec((tb, Hp), lambda i: (i, 0)),
    ] + [pl.BlockSpec(params[name].shape, lambda i: (0, 0))
         for name in _PACKED_NAMES]

    out_specs = pl.BlockSpec((tb, two_Lp), lambda i: (i, 0))
    out_shape = jax.ShapeDtypeStruct((Bp, two_Lp), jnp.float32)

    param_bytes = sum(int(params[n].size) * params[n].dtype.itemsize
                      for n in _PACKED_NAMES)
    flops = 2 * Bp * (Dp * Hp + 5 * Hp * Hp + Hp * two_Lp)
    transcendentals = 2 * Bp * two_Lp                 # exp + log1p
    bytes_accessed = 4 * Bp * (Dp + Hp + two_Lp) + param_bytes

    # Allow more than the scoped default (16/32 MiB) when weights are large,
    # but stay <= 64 MiB so it is valid on v7x's smaller physical VMEM too.
    vmem_limit = int(min(64 * 1024 * 1024,
                         max(32 * 1024 * 1024,
                             4 * param_bytes + 16 * tb * 4 * (Dp + Hp + two_Lp))))

    packed = pl.pallas_call(
        functools.partial(_rssm_encoder_kernel, latent_dim),
        grid=(nb,),
        in_specs=in_specs,
        out_specs=out_specs,
        out_shape=out_shape,
        compiler_params=pltpu.CompilerParams(
            dimension_semantics=("parallel",),
            vmem_limit_bytes=vmem_limit),
        cost_estimate=pl.CostEstimate(
            flops=int(flops),
            transcendentals=int(transcendentals),
            bytes_accessed=int(bytes_accessed)),
    )(obs, h_t, *[params[name] for name in _PACKED_NAMES])

    packed = packed[:B]
    return packed[:, :latent_dim], packed[:, latent_dim:2 * latent_dim]


def init_params(key, obs_dim, hidden_dim, latent_dim):
    """PyTorch-style uniform(+-1/sqrt(fan_in)) init, logical (unpadded) shapes.

    Weights stored [in, out] (transposed vs. nn.Linear), biases [out].
    """
    def linear(k, fan_in, fan_out):
        kw, kb = jax.random.split(k)
        bound = 1.0 / (fan_in ** 0.5)
        w = jax.random.uniform(kw, (fan_in, fan_out), jnp.float32, -bound, bound)
        b = jax.random.uniform(kb, (fan_out,), jnp.float32, -bound, bound)
        return w, b

    keys = jax.random.split(key, 7)
    w1, b1 = linear(keys[0], obs_dim, hidden_dim)
    w2, b2 = linear(keys[1], hidden_dim, hidden_dim)
    w3, b3 = linear(keys[2], hidden_dim, hidden_dim)
    wp1, bp1 = linear(keys[3], 2 * hidden_dim, hidden_dim)
    wp2, bp2 = linear(keys[4], hidden_dim, hidden_dim)
    wm, bm = linear(keys[5], hidden_dim, latent_dim)
    ws, bs = linear(keys[6], hidden_dim, latent_dim)
    return dict(w1=w1, b1=b1, w2=w2, b2=b2, w3=w3, b3=b3,
                wp1=wp1, bp1=bp1, wp2=wp2, bp2=bp2,
                wm=wm, bm=bm, ws=ws, bs=bs)


def pack_params(p, weight_dtype=jnp.bfloat16):
    """Kernel layout: pad feature dims to multiples of 128 (lane-dense), split
    wp1 into obs/h halves, fuse the mean/std heads, cast weights to bf16.
    Biases stay f32 (added on the f32 accumulator)."""
    obs_dim, H = p["w1"].shape
    L = p["wm"].shape[1]
    Dp = _ceil_to(obs_dim, 128)
    Hp = _ceil_to(H, 128)
    two_Lp = _ceil_to(2 * L, 128)

    def pad_w(w, rows, cols):
        w = jnp.pad(w, ((0, rows - w.shape[0]), (0, cols - w.shape[1])))
        return w.astype(weight_dtype)

    def pad_b(b, cols):
        return jnp.pad(b, (0, cols - b.shape[0])).reshape(1, cols).astype(jnp.float32)

    wh = jnp.concatenate([p["wm"], p["ws"]], axis=1)
    bh = jnp.concatenate([p["bm"], p["bs"]], axis=0)
    return dict(
        w1=pad_w(p["w1"], Dp, Hp), b1=pad_b(p["b1"], Hp),
        w2=pad_w(p["w2"], Hp, Hp), b2=pad_b(p["b2"], Hp),
        w3=pad_w(p["w3"], Hp, Hp), b3=pad_b(p["b3"], Hp),
        wp1a=pad_w(p["wp1"][:H], Hp, Hp),
        wp1b=pad_w(p["wp1"][H:], Hp, Hp),
        bp1=pad_b(p["bp1"], Hp),
        wp2=pad_w(p["wp2"], Hp, Hp), bp2=pad_b(p["bp2"], Hp),
        wh=pad_w(wh, Hp, two_Lp), bh=pad_b(bh, two_Lp),
    )


def reference_forward(obs, h_t, p, matmul_dtype=jnp.float32):
    """Pure-JAX reference matching the PyTorch module (optionally with the same
    bf16 matmul-operand casting the kernel uses)."""
    def mm(x, w):
        return jnp.dot(x.astype(matmul_dtype), w.astype(matmul_dtype),
                       preferred_element_type=jnp.float32)
    x = jnp.maximum(mm(obs, p["w1"]) + p["b1"], 0.0)
    x = jnp.maximum(mm(x, p["w2"]) + p["b2"], 0.0)
    obs_encoded = mm(x, p["w3"]) + p["b3"]
    combined = jnp.concatenate([obs_encoded, h_t], axis=-1)
    q = jnp.maximum(mm(combined, p["wp1"]) + p["bp1"], 0.0)
    q = jnp.maximum(mm(q, p["wp2"]) + p["bp2"], 0.0)
    mean = mm(q, p["wm"]) + p["bm"]
    std = jax.nn.softplus(mm(q, p["ws"]) + p["bs"]) + 1e-05
    return mean, std


if __name__ == "__main__":
    B = 12              # not a multiple of 8 -> exercises batch padding
    OBS_DIM = 16
    HIDDEN_DIM = 32
    LATENT_DIM = 16

    key = jax.random.PRNGKey(0)
    k_obs, k_h, k_params = jax.random.split(key, 3)

    obs = jax.random.normal(k_obs, (B, OBS_DIM), jnp.float32)
    h_t = jax.random.normal(k_h, (B, HIDDEN_DIM), jnp.float32)
    params = init_params(k_params, OBS_DIM, HIDDEN_DIM, LATENT_DIM)
    packed_params = pack_params(params, weight_dtype=jnp.bfloat16)

    mean, std = rssm_encoder_forward(obs, h_t, packed_params,
                                     latent_dim=LATENT_DIM)
    jax.block_until_ready((mean, std))

    # Tight check against a reference using the same bf16 matmul operands.
    ref_mean_bf, ref_std_bf = reference_forward(obs, h_t, params, jnp.bfloat16)
    # Coarse sanity check against the full-f32 PyTorch-equivalent reference
    # (loose tolerance only because the kernel matmuls run in bf16).
    ref_mean_f32, ref_std_f32 = reference_forward(obs, h_t, params, jnp.float32)

    assert mean.shape == (B, LATENT_DIM) and std.shape == (B, LATENT_DIM)
    assert jnp.allclose(mean, ref_mean_bf, atol=2e-3, rtol=2e-3), "mean mismatch (bf16 ref)"
    assert jnp.allclose(std, ref_std_bf, atol=2e-3, rtol=2e-3), "std mismatch (bf16 ref)"
    assert jnp.allclose(mean, ref_mean_f32, atol=2e-1, rtol=2e-1), "mean far from f32 ref"
    assert jnp.allclose(std, ref_std_f32, atol=2e-1, rtol=2e-1), "std far from f32 ref"
    assert jnp.all(std > 0), "std must be positive"

    print("KERNEL_OK")
</pallas_src>

<mosaic_0001>
module attributes {stable_mosaic.version = 11 : i64} {
  func.func @_rssm_encoder_kernel(%arg0: i32, %arg1: memref<16x128xf32, #tpu.memory_space<vmem>>, %arg2: memref<16x128xf32, #tpu.memory_space<vmem>>, %arg3: memref<128x128xbf16, #tpu.memory_space<vmem>>, %arg4: memref<1x128xf32, #tpu.memory_space<vmem>>, %arg5: memref<128x128xbf16, #tpu.memory_space<vmem>>, %arg6: memref<1x128xf32, #tpu.memory_space<vmem>>, %arg7: memref<128x128xbf16, #tpu.memory_space<vmem>>, %arg8: memref<1x128xf32, #tpu.memory_space<vmem>>, %arg9: memref<128x128xbf16, #tpu.memory_space<vmem>>, %arg10: memref<128x128xbf16, #tpu.memory_space<vmem>>, %arg11: memref<1x128xf32, #tpu.memory_space<vmem>>, %arg12: memref<128x128xbf16, #tpu.memory_space<vmem>>, %arg13: memref<1x128xf32, #tpu.memory_space<vmem>>, %arg14: memref<128x128xbf16, #tpu.memory_space<vmem>>, %arg15: memref<1x128xf32, #tpu.memory_space<vmem>>, %arg16: memref<16x128xf32, #tpu.memory_space<vmem>>) attributes {dimension_semantics = [#tpu.dimension_semantics<parallel>], iteration_bounds = array<i64: 1>, scalar_prefetch = 0 : i64, scratch_operands = 0 : i64, tpu.core_type = #tpu.core_type<tc>, window_params = [{transform_indices = @transform_0, window_bounds = array<i64: 16, 128>}, {transform_indices = @transform_1, window_bounds = array<i64: 16, 128>}, {pipeline_mode = #tpu.pipeline_mode<synchronous>, transform_indices = @transform_2, window_bounds = array<i64: 128, 128>}, {pipeline_mode = #tpu.pipeline_mode<synchronous>, transform_indices = @transform_3, window_bounds = array<i64: 1, 128>}, {pipeline_mode = #tpu.pipeline_mode<synchronous>, transform_indices = @transform_4, window_bounds = array<i64: 128, 128>}, {pipeline_mode = #tpu.pipeline_mode<synchronous>, transform_indices = @transform_5, window_bounds = array<i64: 1, 128>}, {pipeline_mode = #tpu.pipeline_mode<synchronous>, transform_indices = @transform_6, window_bounds = array<i64: 128, 128>}, {pipeline_mode = #tpu.pipeline_mode<synchronous>, transform_indices = @transform_7, window_bounds = array<i64: 1, 128>}, {pipeline_mode = #tpu.pipeline_mode<synchronous>, transform_indices = @transform_8, window_bounds = array<i64: 128, 128>}, {pipeline_mode = #tpu.pipeline_mode<synchronous>, transform_indices = @transform_9, window_bounds = array<i64: 128, 128>}, {pipeline_mode = #tpu.pipeline_mode<synchronous>, transform_indices = @transform_10, window_bounds = array<i64: 1, 128>}, {pipeline_mode = #tpu.pipeline_mode<synchronous>, transform_indices = @transform_11, window_bounds = array<i64: 128, 128>}, {pipeline_mode = #tpu.pipeline_mode<synchronous>, transform_indices = @transform_12, window_bounds = array<i64: 1, 128>}, {pipeline_mode = #tpu.pipeline_mode<synchronous>, transform_indices = @transform_13, window_bounds = array<i64: 128, 128>}, {pipeline_mode = #tpu.pipeline_mode<synchronous>, transform_indices = @transform_14, window_bounds = array<i64: 1, 128>}, {transform_indices = @transform_15, window_bounds = array<i64: 16, 128>}]} {
    %c0 = arith.constant 0 : index
    %c0_0 = arith.constant 0 : index
    %0 = vector.load %arg1[%c0, %c0_0] : memref<16x128xf32, #tpu.memory_space<vmem>>, vector<16x128xf32>
    %c0_1 = arith.constant 0 : index
    %c0_2 = arith.constant 0 : index
    %1 = vector.load %arg2[%c0_1, %c0_2] : memref<16x128xf32, #tpu.memory_space<vmem>>, vector<16x128xf32>
    %2 = arith.truncf %0 : vector<16x128xf32> to vector<16x128xbf16>
    %c0_3 = arith.constant 0 : index
    %c0_4 = arith.constant 0 : index
    %3 = vector.load %arg3[%c0_3, %c0_4] : memref<128x128xbf16, #tpu.memory_space<vmem>>, vector<128x128xbf16>
    %cst = arith.constant dense<0.000000e+00> : vector<16x128xf32>
    %4 = tpu.matmul %2, %3, %cst {dimension_numbers = #tpu.dot_dimension_numbers<[1], [0], [0], [1], [0, 0, 1, 1], [], []>} : vector<16x128xbf16>, vector<128x128xbf16>, vector<16x128xf32> -> vector<16x128xf32>
    %c0_5 = arith.constant 0 : index
    %c0_6 = arith.constant 0 : index
    %5 = vector.load %arg4[%c0_5, %c0_6] : memref<1x128xf32, #tpu.memory_space<vmem>>, vector<1x128xf32>
    %6 = vector.broadcast %5 : vector<1x128xf32> to vector<16x128xf32>
    %7 = arith.addf %4, %6 : vector<16x128xf32>
    %cst_7 = arith.constant 0.000000e+00 : f32
    %8 = vector.broadcast %cst_7 : f32 to vector<16x128xf32>
    %9 = arith.maximumf %7, %8 : vector<16x128xf32>
    %10 = arith.truncf %9 : vector<16x128xf32> to vector<16x128xbf16>
    %c0_8 = arith.constant 0 : index
    %c0_9 = arith.constant 0 : index
    %11 = vector.load %arg5[%c0_8, %c0_9] : memref<128x128xbf16, #tpu.memory_space<vmem>>, vector<128x128xbf16>
    %cst_10 = arith.constant dense<0.000000e+00> : vector<16x128xf32>
    %12 = tpu.matmul %10, %11, %cst_10 {dimension_numbers = #tpu.dot_dimension_numbers<[1], [0], [0], [1], [0, 0, 1, 1], [], []>} : vector<16x128xbf16>, vector<128x128xbf16>, vector<16x128xf32> -> vector<16x128xf32>
    %c0_11 = arith.constant 0 : index
    %c0_12 = arith.constant 0 : index
    %13 = vector.load %arg6[%c0_11, %c0_12] : memref<1x128xf32, #tpu.memory_space<vmem>>, vector<1x128xf32>
    %14 = vector.broadcast %13 : vector<1x128xf32> to vector<16x128xf32>
    %15 = arith.addf %12, %14 : vector<16x128xf32>
    %cst_13 = arith.constant 0.000000e+00 : f32
    %16 = vector.broadcast %cst_13 : f32 to vector<16x128xf32>
    %17 = arith.maximumf %15, %16 : vector<16x128xf32>
    %18 = arith.truncf %17 : vector<16x128xf32> to vector<16x128xbf16>
    %c0_14 = arith.constant 0 : index
    %c0_15 = arith.constant 0 : index
    %19 = vector.load %arg7[%c0_14, %c0_15] : memref<128x128xbf16, #tpu.memory_space<vmem>>, vector<128x128xbf16>
    %cst_16 = arith.constant dense<0.000000e+00> : vector<16x128xf32>
    %20 = tpu.matmul %18, %19, %cst_16 {dimension_numbers = #tpu.dot_dimension_numbers<[1], [0], [0], [1], [0, 0, 1, 1], [], []>} : vector<16x128xbf16>, vector<128x128xbf16>, vector<16x128xf32> -> vector<16x128xf32>
    %c0_17 = arith.constant 0 : index
    %c0_18 = arith.constant 0 : index
    %21 = vector.load %arg8[%c0_17, %c0_18] : memref<1x128xf32, #tpu.memory_space<vmem>>, vector<1x128xf32>
    %22 = vector.broadcast %21 : vector<1x128xf32> to vector<16x128xf32>
    %23 = arith.addf %20, %22 : vector<16x128xf32>
    %24 = arith.truncf %23 : vector<16x128xf32> to vector<16x128xbf16>
    %c0_19 = arith.constant 0 : index
    %c0_20 = arith.constant 0 : index
    %25 = vector.load %arg9[%c0_19, %c0_20] : memref<128x128xbf16, #tpu.memory_space<vmem>>, vector<128x128xbf16>
    %cst_21 = arith.constant dense<0.000000e+00> : vector<16x128xf32>
    %26 = tpu.matmul %24, %25, %cst_21 {dimension_numbers = #tpu.dot_dimension_numbers<[1], [0], [0], [1], [0, 0, 1, 1], [], []>} : vector<16x128xbf16>, vector<128x128xbf16>, vector<16x128xf32> -> vector<16x128xf32>
    %27 = arith.truncf %1 : vector<16x128xf32> to vector<16x128xbf16>
    %c0_22 = arith.constant 0 : index
    %c0_23 = arith.constant 0 : index
    %28 = vector.load %arg10[%c0_22, %c0_23] : memref<128x128xbf16, #tpu.memory_space<vmem>>, vector<128x128xbf16>
    %cst_24 = arith.constant dense<0.000000e+00> : vector<16x128xf32>
    %29 = tpu.matmul %27, %28, %cst_24 {dimension_numbers = #tpu.dot_dimension_numbers<[1], [0], [0], [1], [0, 0, 1, 1], [], []>} : vector<16x128xbf16>, vector<128x128xbf16>, vector<16x128xf32> -> vector<16x128xf32>
    %30 = arith.addf %26, %29 : vector<16x128xf32>
    %c0_25 = arith.constant 0 : index
    %c0_26 = arith.constant 0 : index
    %31 = vector.load %arg11[%c0_25, %c0_26] : memref<1x128xf32, #tpu.memory_space<vmem>>, vector<1x128xf32>
    %32 = vector.broadcast %31 : vector<1x128xf32> to vector<16x128xf32>
    %33 = arith.addf %30, %32 : vector<16x128xf32>
    %cst_27 = arith.constant 0.000000e+00 : f32
    %34 = vector.broadcast %cst_27 : f32 to vector<16x128xf32>
    %35 = arith.maximumf %33, %34 : vector<16x128xf32>
    %36 = arith.truncf %35 : vector<16x128xf32> to vector<16x128xbf16>
    %c0_28 = arith.constant 0 : index
    %c0_29 = arith.constant 0 : index
    %37 = vector.load %arg12[%c0_28, %c0_29] : memref<128x128xbf16, #tpu.memory_space<vmem>>, vector<128x128xbf16>
    %cst_30 = arith.constant dense<0.000000e+00> : vector<16x128xf32>
    %38 = tpu.matmul %36, %37, %cst_30 {dimension_numbers = #tpu.dot_dimension_numbers<[1], [0], [0], [1], [0, 0, 1, 1], [], []>} : vector<16x128xbf16>, vector<128x128xbf16>, vector<16x128xf32> -> vector<16x128xf32>
    %c0_31 = arith.constant 0 : index
    %c0_32 = arith.constant 0 : index
    %39 = vector.load %arg13[%c0_31, %c0_32] : memref<1x128xf32, #tpu.memory_space<vmem>>, vector<1x128xf32>
    %40 = vector.broadcast %39 : vector<1x128xf32> to vector<16x128xf32>
    %41 = arith.addf %38, %40 : vector<16x128xf32>
    %cst_33 = arith.constant 0.000000e+00 : f32
    %42 = vector.broadcast %cst_33 : f32 to vector<16x128xf32>
    %43 = arith.maximumf %41, %42 : vector<16x128xf32>
    %44 = arith.truncf %43 : vector<16x128xf32> to vector<16x128xbf16>
    %c0_34 = arith.constant 0 : index
    %c0_35 = arith.constant 0 : index
    %45 = vector.load %arg14[%c0_34, %c0_35] : memref<128x128xbf16, #tpu.memory_space<vmem>>, vector<128x128xbf16>
    %cst_36 = arith.constant dense<0.000000e+00> : vector<16x128xf32>
    %46 = tpu.matmul %44, %45, %cst_36 {dimension_numbers = #tpu.dot_dimension_numbers<[1], [0], [0], [1], [0, 0, 1, 1], [], []>} : vector<16x128xbf16>, vector<128x128xbf16>, vector<16x128xf32> -> vector<16x128xf32>
    %c0_37 = arith.constant 0 : index
    %c0_38 = arith.constant 0 : index
    %47 = vector.load %arg15[%c0_37, %c0_38] : memref<1x128xf32, #tpu.memory_space<vmem>>, vector<1x128xf32>
    %48 = vector.broadcast %47 : vector<1x128xf32> to vector<16x128xf32>
    %49 = arith.addf %46, %48 : vector<16x128xf32>
    %50 = tpu.iota {dimensions = array<i32: 1>} : vector<16x128xi32>
    %cst_39 = arith.constant 0.000000e+00 : f32
    %51 = vector.broadcast %cst_39 : f32 to vector<16x128xf32>
    %52 = arith.maximumf %49, %51 : vector<16x128xf32>
    %53 = math.absf %49 : vector<16x128xf32>
    %cst_40 = arith.constant 0.000000e+00 : f32
    %54 = vector.broadcast %cst_40 : f32 to vector<16x128xf32>
    %55 = arith.subf %54, %53 : vector<16x128xf32>
    %56 = math.exp %55 : vector<16x128xf32>
    %57 = math.log1p %56 : vector<16x128xf32>
    %58 = arith.addf %52, %57 : vector<16x128xf32>
    %cst_41 = arith.constant 9.99999974E-6 : f32
    %59 = vector.broadcast %cst_41 : f32 to vector<16x128xf32>
    %60 = arith.addf %58, %59 : vector<16x128xf32>
    %c16_i32 = arith.constant 16 : i32
    %61 = vector.broadcast %c16_i32 : i32 to vector<16x128xi32>
    %62 = arith.cmpi slt, %50, %61 : vector<16x128xi32>
    %63 = arith.select %62, %49, %60 : vector<16x128xi1>, vector<16x128xf32>
    %c0_42 = arith.constant 0 : index
    %c0_43 = arith.constant 0 : index
    %64 = vector.load %arg16[%c0_42, %c0_43] : memref<16x128xf32, #tpu.memory_space<vmem>>, vector<16x128xf32>
    tpu.vector_store %arg16[%c0_42, %c0_43], %63 {strides = array<i32>} : memref<16x128xf32, #tpu.memory_space<vmem>>, vector<16x128xf32>,
    return
  }
  func.func @transform_0(%arg0: i32) -> (i32, i32) {
    %c0_i32 = arith.constant 0 : i32
    %c0_i32_0 = arith.constant 0 : i32
    return %arg0, %c0_i32 : i32, i32
  }
  func.func @transform_1(%arg0: i32) -> (i32, i32) {
    %c0_i32 = arith.constant 0 : i32
    %c0_i32_0 = arith.constant 0 : i32
    return %arg0, %c0_i32 : i32, i32
  }
  func.func @transform_2(%arg0: i32) -> (i32, i32) {
    %c0_i32 = arith.constant 0 : i32
    %c0_i32_0 = arith.constant 0 : i32
    %c0_i32_1 = arith.constant 0 : i32
    return %c0_i32, %c0_i32_0 : i32, i32
  }
  func.func @transform_3(%arg0: i32) -> (i32, i32) {
    %c0_i32 = arith.constant 0 : i32
    %c0_i32_0 = arith.constant 0 : i32
    %c0_i32_1 = arith.constant 0 : i32
    return %c0_i32, %c0_i32_0 : i32, i32
  }
  func.func @transform_4(%arg0: i32) -> (i32, i32) {
    %c0_i32 = arith.constant 0 : i32
    %c0_i32_0 = arith.constant 0 : i32
    %c0_i32_1 = arith.constant 0 : i32
    return %c0_i32, %c0_i32_0 : i32, i32
  }
  func.func @transform_5(%arg0: i32) -> (i32, i32) {
    %c0_i32 = arith.constant 0 : i32
    %c0_i32_0 = arith.constant 0 : i32
    %c0_i32_1 = arith.constant 0 : i32
    return %c0_i32, %c0_i32_0 : i32, i32
  }
  func.func @transform_6(%arg0: i32) -> (i32, i32) {
    %c0_i32 = arith.constant 0 : i32
    %c0_i32_0 = arith.constant 0 : i32
    %c0_i32_1 = arith.constant 0 : i32
    return %c0_i32, %c0_i32_0 : i32, i32
  }
  func.func @transform_7(%arg0: i32) -> (i32, i32) {
    %c0_i32 = arith.constant 0 : i32
    %c0_i32_0 = arith.constant 0 : i32
    %c0_i32_1 = arith.constant 0 : i32
    return %c0_i32, %c0_i32_0 : i32, i32
  }
  func.func @transform_8(%arg0: i32) -> (i32, i32) {
    %c0_i32 = arith.constant 0 : i32
    %c0_i32_0 = arith.constant 0 : i32
    %c0_i32_1 = arith.constant 0 : i32
    return %c0_i32, %c0_i32_0 : i32, i32
  }
  func.func @transform_9(%arg0: i32) -> (i32, i32) {
    %c0_i32 = arith.constant 0 : i32
    %c0_i32_0 = arith.constant 0 : i32
    %c0_i32_1 = arith.constant 0 : i32
    return %c0_i32, %c0_i32_0 : i32, i32
  }
  func.func @transform_10(%arg0: i32) -> (i32, i32) {
    %c0_i32 = arith.constant 0 : i32
    %c0_i32_0 = arith.constant 0 : i32
    %c0_i32_1 = arith.constant 0 : i32
    return %c0_i32, %c0_i32_0 : i32, i32
  }
  func.func @transform_11(%arg0: i32) -> (i32, i32) {
    %c0_i32 = arith.constant 0 : i32
    %c0_i32_0 = arith.constant 0 : i32
    %c0_i32_1 = arith.constant 0 : i32
    return %c0_i32, %c0_i32_0 : i32, i32
  }
  func.func @transform_12(%arg0: i32) -> (i32, i32) {
    %c0_i32 = arith.constant 0 : i32
    %c0_i32_0 = arith.constant 0 : i32
    %c0_i32_1 = arith.constant 0 : i32
    return %c0_i32, %c0_i32_0 : i32, i32
  }
  func.func @transform_13(%arg0: i32) -> (i32, i32) {
    %c0_i32 = arith.constant 0 : i32
    %c0_i32_0 = arith.constant 0 : i32
    %c0_i32_1 = arith.constant 0 : i32
    return %c0_i32, %c0_i32_0 : i32, i32
  }
  func.func @transform_14(%arg0: i32) -> (i32, i32) {
    %c0_i32 = arith.constant 0 : i32
    %c0_i32_0 = arith.constant 0 : i32
    %c0_i32_1 = arith.constant 0 : i32
    return %c0_i32, %c0_i32_0 : i32, i32
  }
  func.func @transform_15(%arg0: i32) -> (i32, i32) {
    %c0_i32 = arith.constant 0 : i32
    %c0_i32_0 = arith.constant 0 : i32
    return %arg0, %c0_i32 : i32, i32
  }
}

</mosaic_0001>

<bundles_post_ra>
// kernel: rssm_encoder_forward.1
= control target key start
LH: loop header
LB: loop body
LE: loop exit
PB: predicated region body
PF: predicated region fallthrough
CT: control target
= control target key end

     0   :  { %20 = vsyncpa [#allocation3], 0  ;;  %s1788_s0 = inlined_call_operand.vmem [shape: f32[16,128], index: 0, kind: input, shape index: {}]   ;;  %s1789_s1 = inlined_call_operand.vmem [shape: f32[16,128], index: 1, kind: input, shape index: {}]   ;;  %s1790_s2 = inlined_call_operand.vmem [shape: bf16[128,128], index: 2, kind: input, shape index: {}]   ;;  %s1791_s3 = inlined_call_operand.vmem [shape: f32[1,128], index: 3, kind: input, shape index: {}]   ;;  %s1792_s4 = inlined_call_operand.hbm [shape: bf16[128,128], index: 4, kind: input, shape index: {}]   ;;  %s1793_s5 = inlined_call_operand.vmem [shape: f32[1,128], index: 5, kind: input, shape index: {}]   ;;  %s1794_s6 = inlined_call_operand.hbm [shape: bf16[128,128], index: 6, kind: input, shape index: {}]   ;;  %s1795_s7 = inlined_call_operand.vmem [shape: f32[1,128], index: 7, kind: input, shape index: {}]   ;;  %s1796_s8 = inlined_call_operand.hbm [shape: bf16[128,128], index: 8, kind: input, shape index: {}]   ;;  %s1797_s9 = inlined_call_operand.hbm [shape: bf16[128,128], index: 9, kind: input, shape index: {}]   ;;  %s1798_s10 = inlined_call_operand.vmem [shape: f32[1,128], index: 10, kind: input, shape index: {}]   ;;  %s1799_s11 = inlined_call_operand.hbm [shape: bf16[128,128], index: 11, kind: input, shape index: {}]   ;;  %s1800_s12 = inlined_call_operand.vmem [shape: f32[1,128], index: 12, kind: input, shape index: {}]   ;;  %s1801_s13 = inlined_call_operand.hbm [shape: bf16[128,128], index: 13, kind: input, shape index: {}]   ;;  %s1802_s14 = inlined_call_operand.vmem [shape: f32[1,128], index: 14, kind: input, shape index: {}]   ;;  %s1803_s15 = inlined_call_operand.vmem [shape: f32[16,128], index: 15, kind: output, shape index: {}]  }
   0x1   :  { %21 = vsyncpa [#allocation5], 0 }
   0x2   :  { %22 = vsyncpa [#allocation8], 0 }
   0x3   :  { %23 = vsyncpa [#allocation11], 0  ;;  %s1457_s18 = smov [#allocation4]   ;;  %s1458_s20 = smov [#allocation7]  }
   0x4   :  { %s51_s19 = sshll.u32 %s1457_s18, 4  ;;  %s77_s21 = sshll.u32 %s1458_s20, 4  ;;  %s52_s19 = int_to_ptr.vmem [resolvable:$true] %s51_s19  ;;  %s1547_s21 = int_to_ptr.vmem [resolvable:$true] %s77_s21 }
   0x5   :  { %s1317_s24 = scalar_lea.hbm %s1794_s6, 1024 }
   0x6   :  { %p1318_p0 = scmp.ne.s32.totalorder %s1794_s6, %s1317_s24  ;;  %p1321_p1 = scmp.lt.u32.totalorder %s1317_s24, %s1794_s6 }
   0x8   :  { %p1323_p2 = pnand %p1321_p1, %p1318_p0 }
   0xa   :  { %1326 = shalt.err (!%p1323_p2)
}
   0xb   :  { %s1327_s29 = scalar_lea.vmem %s52_s19, 1024  ;;  %p1332_p4 = scmp.lt.s32.totalorder %s52_s19, %s52_s19 }
   0xc   :  { %p1328_p3 = scmp.ne.s32.totalorder %s52_s19, %s1327_s29  ;;  %p1333_p5 = scmp.lt.s32.totalorder %s1327_s29, %s1327_s29 }
   0xe   :  { %p1334_p6 = por %p1333_p5, %p1332_p4 }
  0x10   :  { %p1335_p7 = pnand %p1334_p6, %p1328_p3 }
  0x12   :  { %1338 = shalt.err (!%p1335_p7)
}
  0x13   :  { %s1459_s30 = smov 64   ;;  %s1460_s16 = smov 4  }
  0x14   :  { %57 = dma.hbm_to_vmem [thread:$0]  %s1794_s6, 1024, %s52_s19, [#allocation5], %s1459_s30, %s1459_s30, %s1460_s16  }
  0x15   :  { %s1339_s23 = scalar_lea.hbm %s1797_s9, 1024 }
  0x16   :  { %p1340_p8 = scmp.ne.s32.totalorder %s1797_s9, %s1339_s23  ;;  %p1343_p9 = scmp.lt.u32.totalorder %s1339_s23, %s1797_s9 }
  0x18   :  { %p1345_p10 = pnand %p1343_p9, %p1340_p8 }
  0x1a   :  { %1348 = shalt.err (!%p1345_p10)
}
  0x1b   :  { %s1349_s28 = scalar_lea.vmem %s1547_s21, 1024  ;;  %p1354_p12 = scmp.lt.s32.totalorder %s1547_s21, %s1547_s21 }
  0x1c   :  { %p1350_p11 = scmp.ne.s32.totalorder %s1547_s21, %s1349_s28  ;;  %p1355_p13 = scmp.lt.s32.totalorder %s1349_s28, %s1349_s28 }
  0x1e   :  { %p1356_p0 = por %p1355_p13, %p1354_p12 }
  0x20   :  { %p1357_p1 = pnand %p1356_p0, %p1350_p11 }
  0x22   :  { %1360 = shalt.err (!%p1357_p1)
}
  0x23   :  { %83 = dma.hbm_to_vmem [thread:$0]  %s1797_s9, 1024, %s1547_s21, [#allocation8], %s1459_s30, %s1459_s30, %s1460_s16  }
  0x24   :  { %s1461_s29 = smov [#allocation2]   ;;  %s1462_s18 = smov [#allocation6]  }
  0x25   :  { %s37_s17 = sshll.u32 %s1461_s29, 4  ;;  %s65_s20 = sshll.u32 %s1462_s18, 4  ;;  %s38_s17 = int_to_ptr.vmem [resolvable:$true] %s37_s17  ;;  %s1584_s20 = int_to_ptr.vmem [resolvable:$true] %s65_s20 }
  0x26   :  { %s1361_s24 = scalar_lea.hbm %s1792_s4, 1024 }
  0x27   :  { %p1362_p2 = scmp.ne.s32.totalorder %s1792_s4, %s1361_s24  ;;  %p1365_p3 = scmp.lt.u32.totalorder %s1361_s24, %s1792_s4 }
  0x29   :  { %p1367_p4 = pnand %p1365_p3, %p1362_p2 }
  0x2b   :  { %1370 = shalt.err (!%p1367_p4)
}
  0x2c   :  { %s1371_s9 = scalar_lea.vmem %s38_s17, 1024  ;;  %p1376_p6 = scmp.lt.s32.totalorder %s38_s17, %s38_s17 }
  0x2d   :  { %p1372_p5 = scmp.ne.s32.totalorder %s38_s17, %s1371_s9  ;;  %p1377_p7 = scmp.lt.s32.totalorder %s1371_s9, %s1371_s9 }
  0x2f   :  { %p1378_p8 = por %p1377_p7, %p1376_p6 }
  0x31   :  { %p1379_p9 = pnand %p1378_p8, %p1372_p5 }
  0x33   :  { %1382 = shalt.err (!%p1379_p9)
}
  0x34   :  { %43 = dma.hbm_to_vmem [thread:$0]  %s1792_s4, 1024, %s38_s17, [#allocation3], %s1459_s30, %s1459_s30, %s1460_s16  }
  0x35   :  { %s1383_s18 = scalar_lea.hbm %s1796_s8, 1024 }
  0x36   :  { %p1384_p10 = scmp.ne.s32.totalorder %s1796_s8, %s1383_s18  ;;  %p1387_p11 = scmp.lt.u32.totalorder %s1383_s18, %s1796_s8 }
  0x38   :  { %p1389_p12 = pnand %p1387_p11, %p1384_p10 }
  0x3a   :  { %1392 = shalt.err (!%p1389_p12)
}
  0x3b   :  { %s1393_s26 = scalar_lea.vmem %s1584_s20, 1024  ;;  %p1398_p0 = scmp.lt.s32.totalorder %s1584_s20, %s1584_s20 }
  0x3c   :  { %p1394_p13 = scmp.ne.s32.totalorder %s1584_s20, %s1393_s26  ;;  %p1399_p1 = scmp.lt.s32.totalorder %s1393_s26, %s1393_s26 }
  0x3e   :  { %p1400_p2 = por %p1399_p1, %p1398_p0 }
  0x40   :  { %p1401_p3 = pnand %p1400_p2, %p1394_p13 }
  0x42   :  { %1404 = shalt.err (!%p1401_p3)
}
  0x43   :  { %71 = dma.hbm_to_vmem [thread:$0]  %s1796_s8, 1024, %s1584_s20, [#allocation5], %s1459_s30, %s1459_s30, %s1460_s16  }
  0x44   :  { %s1463_s27 = smov [#allocation9]   ;;  %s1464_s9 = smov [#allocation10]  }
  0x45   :  { %s91_s28 = sshll.u32 %s1463_s27, 4  ;;  %s105_s21 = sshll.u32 %s1464_s9, 4  ;;  %s92_s28 = int_to_ptr.vmem [resolvable:$true] %s91_s28  ;;  %s1621_s21 = int_to_ptr.vmem [resolvable:$true] %s105_s21 }
  0x46   :  { %s1405_s29 = scalar_lea.hbm %s1799_s11, 1024 }
  0x47   :  { %p1406_p4 = scmp.ne.s32.totalorder %s1799_s11, %s1405_s29  ;;  %p1409_p5 = scmp.lt.u32.totalorder %s1405_s29, %s1799_s11 }
  0x49   :  { %p1411_p6 = pnand %p1409_p5, %p1406_p4 }
  0x4b   :  { %1414 = shalt.err (!%p1411_p6)
}
  0x4c   :  { %s1415_s8 = scalar_lea.vmem %s92_s28, 1024  ;;  %p1420_p8 = scmp.lt.s32.totalorder %s92_s28, %s92_s28 }
  0x4d   :  { %p1416_p7 = scmp.ne.s32.totalorder %s92_s28, %s1415_s8  ;;  %p1421_p9 = scmp.lt.s32.totalorder %s1415_s8, %s1415_s8 }
  0x4f   :  { %p1422_p10 = por %p1421_p9, %p1420_p8 }
  0x51   :  { %p1423_p11 = pnand %p1422_p10, %p1416_p7 }
  0x53   :  { %1426 = shalt.err (!%p1423_p11)
}
  0x54   :  { %97 = dma.hbm_to_vmem [thread:$0]  %s1799_s11, 1024, %s92_s28, [#allocation8], %s1459_s30, %s1459_s30, %s1460_s16  }
  0x55   :  { %s1427_s17 = scalar_lea.hbm %s1801_s13, 1024 }
  0x56   :  { %p1428_p12 = scmp.ne.s32.totalorder %s1801_s13, %s1427_s17  ;;  %p1431_p13 = scmp.lt.u32.totalorder %s1427_s17, %s1801_s13 }
  0x58   :  { %p1433_p0 = pnand %p1431_p13, %p1428_p12 }
  0x5a   :  { %1436 = shalt.err (!%p1433_p0)
}
  0x5b   :  { %s1437_s29 = scalar_lea.vmem %s1621_s21, 1024  ;;  %p1442_p2 = scmp.lt.s32.totalorder %s1621_s21, %s1621_s21 }
  0x5c   :  { %p1438_p1 = scmp.ne.s32.totalorder %s1621_s21, %s1437_s29  ;;  %p1443_p3 = scmp.lt.s32.totalorder %s1437_s29, %s1437_s29 }
  0x5e   :  { %p1444_p4 = por %p1443_p3, %p1442_p2 }
  0x60   :  { %p1445_p5 = pnand %p1444_p4, %p1438_p1 }
  0x62   :  { %1448 = shalt.err (!%p1445_p5)
}
  0x63   :  { %111 = dma.hbm_to_vmem [thread:$0]  %s1801_s13, 1024, %s1621_s21, [#allocation11], %s1459_s30, %s1459_s30, %s1460_s16  }
  0x64   :  { %1449 = dma.done.wait [#allocation3], 1024  }
  0x65   :  { %1450 = vsyncadd [#allocation3], 4294966272 }
  0x66   :  { %1451 = dma.done.wait [#allocation5], 2048  }
  0x67   :  { %1452 = vsyncadd [#allocation5], 4294965248 }
  0x68   :  { %1453 = dma.done.wait [#allocation8], 2048  }
  0x69   :  { %1454 = vsyncadd [#allocation8], 4294965248 }
  0x6a   :  { %1455 = dma.done.wait [#allocation11], 1024  }
  0x6b   :  { %1456 = vsyncadd [#allocation11], 4294966272  ;;  %v1465_v0 = vmov 0.0   ;;  %vm1466_vm0 = vmmov 0   ;;  %v1253_v1 = vld [vmem:[%s1790_s2] sm:$0xff]   ;;  %v1254_v2 = vld [vmem:[%s1790_s2 + $0x8] sm:$0xff]  }
  0x6c   :  { %1103 = vmatprep.subr.bf16.mxu0 %v1465_v0  ;;  %1119 = vmatprep.mubr.msk.bf16.mxu0 %vm1466_vm0, %v1465_v0  ;;  %v1255_v3 = vld [vmem:[%s1790_s2 + $0x10] sm:$0xff]   ;;  %v1261_v4 = vld [vmem:[#allocation2] sm:$0xff]   ;;  %v1256_v5 = vld [vmem:[%s1790_s2 + $0x18] sm:$0xff]  }
  0x6d   :  { %1123 = vmatprep.subr.bf16.mxu1 %v1465_v0  ;;  %1139 = vmatprep.mubr.msk.bf16.mxu1 %vm1466_vm0, %v1465_v0  ;;  %v1262_v6 = vld [vmem:[#allocation2 + $0x8] sm:$0xff]   ;;  %v1257_v7 = vld [vmem:[%s1790_s2 + $0x20] sm:$0xff]   ;;  %v1263_v8 = vld [vmem:[#allocation2 + $0x10] sm:$0xff]  }
  0x6e   :  { %1104 = vmatpush3.bf16.msra.mxu0 %v1253_v1  ;;  %1124 = vmatpush3.bf16.msra.mxu1 %v1261_v4  ;;  %v1258_v9 = vld [vmem:[%s1790_s2 + $0x28] sm:$0xff]   ;;  %v1264_v10 = vld [vmem:[#allocation2 + $0x18] sm:$0xff]   ;;  %v1259_v11 = vld [vmem:[%s1790_s2 + $0x30] sm:$0xff]  }
  0x6f   :  { %1105 = vmatprep.subr.bf16.mxu0 %v1465_v0  ;;  %1125 = vmatprep.subr.bf16.mxu1 %v1465_v0  ;;  %v1265_v12 = vld [vmem:[#allocation2 + $0x20] sm:$0xff]   ;;  %v1260_v13 = vld [vmem:[%s1790_s2 + $0x38] sm:$0xff]   ;;  %v134_v15 = vld [vmem:[%s1788_s0 + $0x8] sm:$0xff] }
  0x70   :  { %v133_v14 = vld [vmem:[%s1788_s0] sm:$0xff]  ;;  %v1266_v16 = vld [vmem:[#allocation2 + $0x28] sm:$0xff]   ;;  %v1267_v18 = vld [vmem:[#allocation2 + $0x30] sm:$0xff]  }
  0x71   :  { %v137_v17 = vpack.c.bf16 %v134_v15, %v133_v14  ;;  %v1268_v19 = vld [vmem:[#allocation2 + $0x38] sm:$0xff]   ;;  %v1269_v20 = vld [vmem:[#allocation4] sm:$0xff]   ;;  %v1270_v21 = vld [vmem:[#allocation4 + $0x8] sm:$0xff]  }
  0x72   :  { %1106 = vmatpush3.bf16.msra.mxu0 %v1254_v2  ;;  %1126 = vmatpush3.bf16.msra.mxu1 %v1262_v6  ;;  %v1271_v22 = vld [vmem:[#allocation4 + $0x10] sm:$0xff]   ;;  %v1272_v23 = vld [vmem:[#allocation4 + $0x18] sm:$0xff]   ;;  %v1273_v24 = vld [vmem:[#allocation4 + $0x20] sm:$0xff]  }
  0x73   :  { %1107 = vmatprep.subr.bf16.mxu0 %v1465_v0  ;;  %1127 = vmatprep.subr.bf16.mxu1 %v1465_v0  ;;  %v1274_v25 = vld [vmem:[#allocation4 + $0x28] sm:$0xff]   ;;  %v978_v26 = vld [vmem:[%s1791_s3] ss:$0 sm:$0xff]  ;;  %v1275_v36 = vld [vmem:[#allocation4 + $0x30] sm:$0xff]  }
  0x74   :  { %v1276_v37 = vld [vmem:[#allocation4 + $0x38] sm:$0xff]   ;;  %v1277_v38 = vld [vmem:[#allocation7] sm:$0xff]   ;;  %v1279_v39 = vld [vmem:[#allocation7 + $0x8] sm:$0xff]  }
  0x75   :  { %v1281_v40 = vld [vmem:[#allocation7 + $0x10] sm:$0xff]   ;;  %v1283_v41 = vld [vmem:[#allocation7 + $0x18] sm:$0xff]   ;;  %v1285_v42 = vld [vmem:[#allocation7 + $0x20] sm:$0xff]  }
  0x76   :  { %1108 = vmatpush3.bf16.msra.mxu0 %v1255_v3  ;;  %1128 = vmatpush3.bf16.msra.mxu1 %v1263_v8  ;;  %v1287_v43 = vld [vmem:[#allocation7 + $0x28] sm:$0xff]   ;;  %v1289_v44 = vld [vmem:[#allocation7 + $0x30] sm:$0xff]   ;;  %v987_v45 = vld [vmem:[%s1793_s5] ss:$0 sm:$0xff] }
  0x77   :  { %1109 = vmatprep.subr.bf16.mxu0 %v1465_v0  ;;  %1129 = vmatprep.subr.bf16.mxu1 %v1465_v0  ;;  %v1278_v54 = vld [vmem:[#allocation6] sm:$0xff]   ;;  %v1280_v56 = vld [vmem:[#allocation6 + $0x8] sm:$0xff]   ;;  %v1282_v57 = vld [vmem:[#allocation6 + $0x10] sm:$0xff]  }
  0x78   :  { %v1284_v58 = vld [vmem:[#allocation6 + $0x18] sm:$0xff]   ;;  %v1286_v59 = vld [vmem:[#allocation6 + $0x20] sm:$0xff]   ;;  %v1288_v60 = vld [vmem:[#allocation6 + $0x28] sm:$0xff]  }
  0x79   :  { %v1290_v61 = vld [vmem:[#allocation6 + $0x30] sm:$0xff]   ;;  %v1291_v62 = vld [vmem:[#allocation7 + $0x38] sm:$0xff]   ;;  %v135_v63 = vld [vmem:[%s1789_s1] sm:$0xff] }
  0x7a   :  { %1110 = vmatpush3.bf16.msra.mxu0 %v1256_v5  ;;  %1130 = vmatpush3.bf16.msra.mxu1 %v1264_v10  ;;  %v136_v1 = vld [vmem:[%s1789_s1 + $0x8] sm:$0xff]  ;;  %v1292_v3 = vld [vmem:[#allocation6 + $0x38] sm:$0xff]   ;;  %v1293_v4 = vld [vmem:[#allocation9] sm:$0xff]  }
  0x7b   :  { %1111 = vmatprep.subr.bf16.mxu0 %v1465_v0  ;;  %1131 = vmatprep.subr.bf16.mxu1 %v1465_v0  ;;  %v497_v2 = vpack.c.bf16 %v136_v1, %v135_v63  ;;  %v1294_v5 = vld [vmem:[#allocation9 + $0x8] sm:$0xff]   ;;  %v1295_v6 = vld [vmem:[#allocation9 + $0x10] sm:$0xff]   ;;  %v1297_v8 = vld [vmem:[#allocation9 + $0x20] sm:$0xff]  }
  0x7e   :  { %1112 = vmatpush3.bf16.msra.mxu0 %v1257_v7  ;;  %1132 = vmatpush3.bf16.msra.mxu1 %v1265_v12  ;;  %v1296_v7 = vld [vmem:[#allocation9 + $0x18] sm:$0xff]  }
  0x7f   :  { %1113 = vmatprep.subr.bf16.mxu0 %v1465_v0  ;;  %1133 = vmatprep.subr.bf16.mxu1 %v1465_v0 }
  0x82   :  { %1114 = vmatpush3.bf16.msra.mxu0 %v1258_v9  ;;  %1134 = vmatpush3.bf16.msra.mxu1 %v1266_v16  ;;  %v996_v9 = vld [vmem:[%s1795_s7] ss:$0 sm:$0xff] }
  0x83   :  { %1115 = vmatprep.subr.bf16.mxu0 %v1465_v0  ;;  %1135 = vmatprep.subr.bf16.mxu1 %v1465_v0 }
  0x86   :  { %1116 = vmatpush3.bf16.msra.mxu0 %v1259_v11  ;;  %1136 = vmatpush3.bf16.msra.mxu1 %v1267_v18 }
  0x87   :  { %1117 = vmatprep.subr.bf16.mxu0 %v1465_v0  ;;  %1137 = vmatprep.subr.bf16.mxu1 %v1465_v0 }
  0x8a   :  { %1118 = vmatpush3.bf16.msra.mxu0 %v1260_v13  ;;  %1138 = vmatpush3.bf16.msra.mxu1 %v1268_v19  ;;  %v1298_v19 = vld [vmem:[#allocation9 + $0x28] sm:$0xff]  }
  0x8b   :  { %1143 = vmatprep.subr.bf16.mxu0 %v1465_v0  ;;  %1163 = vmatprep.subr.bf16.mxu1 %v1465_v0 }
  0x8d   :  { %1120 = vmatmul.mubr.bf16.vlgmr.msra.gmra.mrb[0].mxu0 %v137_v17 }
  0x8e   :  { %1159 = vmatprep.mubr.msk.bf16.mxu0 %vm1466_vm0, %v1465_v0  ;;  %1144 = vmatpush3.bf16.msra.mxu0 %v1269_v20 }
  0x8f   :  { %1145 = vmatprep.subr.bf16.mxu0 %v1465_v0 }
  0x92   :  { %1146 = vmatpush3.bf16.msra.mxu0 %v1270_v21 }
  0x93   :  { %1147 = vmatprep.subr.bf16.mxu0 %v1465_v0 }
  0x96   :  { %1148 = vmatpush3.bf16.msra.mxu0 %v1271_v22  ;;  %v1299_v22 = vld [vmem:[#allocation9 + $0x30] sm:$0xff]  }
  0x97   :  { %1149 = vmatprep.subr.bf16.mxu0 %v1465_v0 }
  0x9a   :  { %1150 = vmatpush3.bf16.msra.mxu0 %v1272_v23  ;;  %v1300_v23 = vld [vmem:[#allocation9 + $0x38] sm:$0xff]  }
  0x9b   :  { %1151 = vmatprep.subr.bf16.mxu0 %v1465_v0 }
  0x9e   :  { %1152 = vmatpush3.bf16.msra.mxu0 %v1273_v24  ;;  %v1301_v24 = vld [vmem:[#allocation10] sm:$0xff]  }
  0x9f   :  { %1153 = vmatprep.subr.bf16.mxu0 %v1465_v0 }
  0xa2   :  { %1154 = vmatpush3.bf16.msra.mxu0 %v1274_v25  ;;  %v1302_v25 = vld [vmem:[#allocation10 + $0x8] sm:$0xff]  }
  0xa3   :  { %1155 = vmatprep.subr.bf16.mxu0 %v1465_v0 }
  0xa6   :  { %1156 = vmatpush3.bf16.msra.mxu0 %v1275_v36 }
  0xa7   :  { %1157 = vmatprep.subr.bf16.mxu0 %v1465_v0 }
  0xaa   :  { %1158 = vmatpush3.bf16.msra.mxu0 %v1276_v37 }
  0xab   :  { %1183 = vmatprep.subr.bf16.mxu0 %v1465_v0 }
 0x160   :  { %v243_v27 = vpop.f32.mrb[0].mxu0 }
 0x161   :  { %v244_v28 = vadd.f32 %v978_v26, %v243_v27  ;;  %v1121_v29 = vpop.f32.mrb[1].mxu0  ;;  %v1304_v27 = vld [vmem:[#allocation10 + $0x18] sm:$0xff]  }
 0x162   :  { %v246_v30 = vpop.f32.mrb[2].mxu0  ;;  %v1306_v29 = vld [vmem:[#allocation10 + $0x28] sm:$0xff]  }
 0x163   :  { %v247_v31 = vadd.f32 %v978_v26, %v246_v30  ;;  %v1122_v32 = vpop.f32.mrb[3].mxu0  ;;  %v250_v33 = vmax.f32 %v244_v28, 0.0  ;;  %v1303_v26 = vld [vmem:[#allocation10 + $0x10] sm:$0xff]   ;;  %v1305_v28 = vld [vmem:[#allocation10 + $0x20] sm:$0xff]  }
 0x165   :  { %v251_v34 = vmax.f32 %v247_v31, 0.0  ;;  %v1021_v31 = vld [vmem:[%s1798_s10] ss:$0 sm:$0xff] }
 0x167   :  { %v252_v35 = vpack.c.bf16 %v251_v34, %v250_v33 }
 0x169   :  { %1140 = vmatmul.mubr.bf16.vlgmr.msra.gmra.mrb[0].mxu1 %v252_v35 }
 0x16a   :  { %1179 = vmatprep.mubr.msk.bf16.mxu1 %vm1466_vm0, %v1465_v0  ;;  %1164 = vmatpush3.bf16.msra.mxu1 %v1277_v38 }
 0x16b   :  { %1165 = vmatprep.subr.bf16.mxu1 %v1465_v0 }
 0x16e   :  { %1166 = vmatpush3.bf16.msra.mxu1 %v1279_v39 }
 0x16f   :  { %1167 = vmatprep.subr.bf16.mxu1 %v1465_v0 }
 0x172   :  { %1168 = vmatpush3.bf16.msra.mxu1 %v1281_v40 }
 0x173   :  { %1169 = vmatprep.subr.bf16.mxu1 %v1465_v0 }
 0x176   :  { %1170 = vmatpush3.bf16.msra.mxu1 %v1283_v41 }
 0x177   :  { %1171 = vmatprep.subr.bf16.mxu1 %v1465_v0 }
 0x17a   :  { %1172 = vmatpush3.bf16.msra.mxu1 %v1285_v42  ;;  %v1307_v42 = vld [vmem:[#allocation10 + $0x30] sm:$0xff]  }
 0x17b   :  { %1173 = vmatprep.subr.bf16.mxu1 %v1465_v0 }
 0x17e   :  { %1174 = vmatpush3.bf16.msra.mxu1 %v1287_v43  ;;  %v1308_v43 = vld [vmem:[#allocation10 + $0x38] sm:$0xff]  }
 0x17f   :  { %1175 = vmatprep.subr.bf16.mxu1 %v1465_v0 }
 0x182   :  { %1176 = vmatpush3.bf16.msra.mxu1 %v1289_v44  ;;  %v1022_v44 = vld [vmem:[%s1800_s12] ss:$0 sm:$0xff] }
 0x183   :  { %1177 = vmatprep.subr.bf16.mxu1 %v1465_v0 }
 0x186   :  { %1178 = vmatpush3.bf16.msra.mxu1 %v1291_v62 }
 0x187   :  { %1203 = vmatprep.subr.bf16.mxu1 %v1465_v0 }
 0x189   :  { %1180 = vmatmul.mubr.bf16.vlgmr.msra.gmra.mrb[4].mxu1 %v497_v2 }
 0x18a   :  { %1219 = vmatprep.mubr.msk.bf16.mxu1 %vm1466_vm0, %v1465_v0  ;;  %1204 = vmatpush3.bf16.msra.mxu1 %v1293_v4 }
 0x18b   :  { %1205 = vmatprep.subr.bf16.mxu1 %v1465_v0 }
 0x18e   :  { %1206 = vmatpush3.bf16.msra.mxu1 %v1294_v5 }
 0x18f   :  { %1207 = vmatprep.subr.bf16.mxu1 %v1465_v0 }
 0x192   :  { %1208 = vmatpush3.bf16.msra.mxu1 %v1295_v6 }
 0x193   :  { %1209 = vmatprep.subr.bf16.mxu1 %v1465_v0 }
 0x196   :  { %1210 = vmatpush3.bf16.msra.mxu1 %v1296_v7 }
 0x197   :  { %1211 = vmatprep.subr.bf16.mxu1 %v1465_v0 }
 0x19a   :  { %1212 = vmatpush3.bf16.msra.mxu1 %v1297_v8 }
 0x19b   :  { %1213 = vmatprep.subr.bf16.mxu1 %v1465_v0 }
 0x19e   :  { %1214 = vmatpush3.bf16.msra.mxu1 %v1298_v19 }
 0x19f   :  { %1215 = vmatprep.subr.bf16.mxu1 %v1465_v0 }
 0x1a2   :  { %1216 = vmatpush3.bf16.msra.mxu1 %v1299_v22 }
 0x1a3   :  { %1217 = vmatprep.subr.bf16.mxu1 %v1465_v0 }
 0x1a6   :  { %1218 = vmatpush3.bf16.msra.mxu1 %v1300_v23 }
 0x23c   :  { %v358_v46 = vpop.f32.mrb[0].mxu1 }
 0x23d   :  { %v359_v47 = vadd.f32 %v987_v45, %v358_v46  ;;  %v1141_v48 = vpop.f32.mrb[1].mxu1 }
 0x23e   :  { %v361_v49 = vpop.f32.mrb[2].mxu1 }
 0x23f   :  { %v362_v50 = vadd.f32 %v987_v45, %v361_v49  ;;  %v1142_v51 = vpop.f32.mrb[3].mxu1  ;;  %v365_v52 = vmax.f32 %v359_v47, 0.0 }
 0x241   :  { %v366_v53 = vmax.f32 %v362_v50, 0.0 }
 0x243   :  { %v367_v55 = vpack.c.bf16 %v366_v53, %v365_v52 }
 0x245   :  { %1160 = vmatmul.mubr.bf16.vlgmr.msra.gmra.mrb[4].mxu0 %v367_v55 }
 0x246   :  { %1184 = vmatpush3.bf16.msra.mxu0 %v1278_v54  ;;  %1199 = vmatprep.mubr.msk.bf16.mxu0 %vm1466_vm0, %v1465_v0 }
 0x247   :  { %1185 = vmatprep.subr.bf16.mxu0 %v1465_v0 }
 0x24a   :  { %1186 = vmatpush3.bf16.msra.mxu0 %v1280_v56 }
 0x24b   :  { %1187 = vmatprep.subr.bf16.mxu0 %v1465_v0 }
 0x24e   :  { %1188 = vmatpush3.bf16.msra.mxu0 %v1282_v57 }
 0x24f   :  { %1189 = vmatprep.subr.bf16.mxu0 %v1465_v0 }
 0x252   :  { %1190 = vmatpush3.bf16.msra.mxu0 %v1284_v58 }
 0x253   :  { %1191 = vmatprep.subr.bf16.mxu0 %v1465_v0 }
 0x256   :  { %1192 = vmatpush3.bf16.msra.mxu0 %v1286_v59 }
 0x257   :  { %1193 = vmatprep.subr.bf16.mxu0 %v1465_v0 }
 0x25a   :  { %1194 = vmatpush3.bf16.msra.mxu0 %v1288_v60 }
 0x25b   :  { %1195 = vmatprep.subr.bf16.mxu0 %v1465_v0 }
 0x25c   :  { %v596_v17 = vpop.f32.mrb[4].mxu1 }
 0x25d   :  { %v1181_v18 = vpop.f32.mrb[5].mxu1 }
 0x25e   :  { %1196 = vmatpush3.bf16.msra.mxu0 %v1290_v61  ;;  %v599_v20 = vpop.f32.mrb[6].mxu1 }
 0x25f   :  { %1197 = vmatprep.subr.bf16.mxu0 %v1465_v0  ;;  %v1182_v21 = vpop.f32.mrb[7].mxu1 }
 0x262   :  { %1198 = vmatpush3.bf16.msra.mxu0 %v1292_v3 }
 0x263   :  { %1223 = vmatprep.subr.bf16.mxu0 %v1465_v0 }
 0x318   :  { %v473_v10 = vpop.f32.mrb[4].mxu0 }
 0x319   :  { %v1161_v11 = vpop.f32.mrb[5].mxu0  ;;  %v474_v13 = vadd.f32 %v996_v9, %v473_v10 }
 0x31a   :  { %v476_v12 = vpop.f32.mrb[6].mxu0 }
 0x31b   :  { %v477_v14 = vadd.f32 %v996_v9, %v476_v12  ;;  %v1162_v15 = vpop.f32.mrb[7].mxu0  ;;  %v931_v9 = vlaneseq }
 0x31d   :  { %v480_v16 = vpack.c.bf16 %v477_v14, %v474_v13  ;;  %v932_v15 = vand.u32 127, %v931_v9 }
 0x31f   :  { %1200 = vmatmul.mubr.bf16.vlgmr.msra.gmra.mrb[8].mxu0 %v480_v16  ;;  %vm965_vm3 = vcmp.lt.s32.totalorder %v932_v15, 16 }
 0x320   :  { %1239 = vmatprep.mubr.msk.bf16.mxu0 %vm1466_vm0, %v1465_v0  ;;  %1224 = vmatpush3.bf16.msra.mxu0 %v1301_v24 }
 0x321   :  { %1225 = vmatprep.subr.bf16.mxu0 %v1465_v0 }
 0x324   :  { %1226 = vmatpush3.bf16.msra.mxu0 %v1302_v25 }
 0x325   :  { %1227 = vmatprep.subr.bf16.mxu0 %v1465_v0 }
 0x328   :  { %1228 = vmatpush3.bf16.msra.mxu0 %v1303_v26 }
 0x329   :  { %1229 = vmatprep.subr.bf16.mxu0 %v1465_v0 }
 0x32c   :  { %1230 = vmatpush3.bf16.msra.mxu0 %v1304_v27 }
 0x32d   :  { %1231 = vmatprep.subr.bf16.mxu0 %v1465_v0 }
 0x330   :  { %1232 = vmatpush3.bf16.msra.mxu0 %v1305_v28 }
 0x331   :  { %1233 = vmatprep.subr.bf16.mxu0 %v1465_v0 }
 0x334   :  { %1234 = vmatpush3.bf16.msra.mxu0 %v1306_v29 }
 0x335   :  { %1235 = vmatprep.subr.bf16.mxu0 %v1465_v0 }
 0x338   :  { %1236 = vmatpush3.bf16.msra.mxu0 %v1307_v42 }
 0x339   :  { %1237 = vmatprep.subr.bf16.mxu0 %v1465_v0  ;;  %v1031_v0 = vld [vmem:[%s1802_s14] ss:$0 sm:$0xff] }
 0x33c   :  { %1238 = vmatpush3.bf16.msra.mxu0 %v1308_v43 }
 0x3f2   :  { %v685_v30 = vpop.f32.mrb[8].mxu0 }
 0x3f3   :  { %v686_v32 = vadd.f32 %v685_v30, %v596_v17  ;;  %v1201_v33 = vpop.f32.mrb[9].mxu0 }
 0x3f4   :  { %v688_v34 = vpop.f32.mrb[10].mxu0 }
 0x3f5   :  { %v699_v35 = vadd.f32 %v1021_v31, %v686_v32  ;;  %v689_v36 = vadd.f32 %v688_v34, %v599_v20  ;;  %v1202_v37 = vpop.f32.mrb[11].mxu0 }
 0x3f7   :  { %v700_v38 = vadd.f32 %v1021_v31, %v689_v36  ;;  %v701_v39 = vmax.f32 %v699_v35, 0.0 }
 0x3f9   :  { %v702_v40 = vmax.f32 %v700_v38, 0.0 }
 0x3fb   :  { %v703_v41 = vpack.c.bf16 %v702_v40, %v701_v39 }
 0x3fd   :  { %1220 = vmatmul.mubr.bf16.vlgmr.msra.gmra.mrb[8].mxu1 %v703_v41 }
 0x4d0   :  { %v809_v45 = vpop.f32.mrb[8].mxu1 }
 0x4d1   :  { %v810_v46 = vadd.f32 %v1022_v44, %v809_v45  ;;  %v1221_v47 = vpop.f32.mrb[9].mxu1 }
 0x4d2   :  { %v812_v48 = vpop.f32.mrb[10].mxu1 }
 0x4d3   :  { %v813_v49 = vadd.f32 %v1022_v44, %v812_v48  ;;  %v1222_v50 = vpop.f32.mrb[11].mxu1  ;;  %v816_v51 = vmax.f32 %v810_v46, 0.0 }
 0x4d5   :  { %v817_v52 = vmax.f32 %v813_v49, 0.0 }
 0x4d7   :  { %v818_v53 = vpack.c.bf16 %v817_v52, %v816_v51 }
 0x4d9   :  { %1240 = vmatmul.mubr.bf16.vlgmr.msra.gmra.mrb[12].mxu0 %v818_v53 }
 0x5ac   :  { %v924_v54 = vpop.f32.mrb[12].mxu0 }
 0x5ad   :  { %v925_v55 = vadd.f32 %v1031_v0, %v924_v54  ;;  %v1241_v56 = vpop.f32.mrb[13].mxu0 }
 0x5ae   :  { %v927_v57 = vpop.f32.mrb[14].mxu0 }
 0x5af   :  { %v935_v58 = vand.u32 2147483647, %v925_v55  ;;  %v928_v59 = vadd.f32 %v1031_v0, %v927_v57  ;;  %v1242_v60 = vpop.f32.mrb[15].mxu0  ;;  %v933_v19 = vmax.f32 %v925_v55, 0.0 }
 0x5b1   :  { %v937_v61 = vsub.f32 0.0, %v935_v58  ;;  %v936_v62 = vand.u32 2147483647, %v928_v59  ;;  %v934_v24 = vmax.f32 %v928_v59, 0.0 }
 0x5b3   :  { %v939_v63 = vmul.f32 1.442695, %v937_v61  ;;  %v938_v1 = vsub.f32 0.0, %v936_v62 }
 0x5b5   :  { %1309 = vpow2.f32 %v939_v63  ;;  %v941_v2 = vmul.f32 1.442695, %v938_v1 }
 0x5b7   :  { %1311 = vpow2.f32 %v941_v2 }
 0x5bf   :  { %v1310_v3 = vpop.eup %1309 }
 0x5c0   :  { %v943_v4 = vadd.f32 1.0, %v1310_v3  ;;  %v946_v7 = vmul.f32 -0.5, %v1310_v3  ;;  %v949_v11 = vand.u32 2147483647, %v1310_v3 }
 0x5c1   :  { %v1312_v5 = vpop.eup %1311 }
 0x5c2   :  { %1313 = vlog2.f32 %v943_v4  ;;  %v952_v6 = vadd.f32 1.0, %v1312_v5  ;;  %v955_v8 = vmul.f32 -0.5, %v1312_v5  ;;  %v947_v10 = vadd.f32 1.0, %v946_v7 }
 0x5c3   :  { %v958_v14 = vand.u32 2147483647, %v1312_v5  ;;  %vm950_vm1 = vcmp.lt.f32.partialorder %v949_v11, 0.0004427343 }
 0x5c4   :  { %1315 = vlog2.f32 %v952_v6  ;;  %v956_v12 = vadd.f32 1.0, %v955_v8  ;;  %v948_v17 = vmul.f32 %v1310_v3, %v947_v10 }
 0x5c5   :  { %vm959_vm2 = vcmp.lt.f32.partialorder %v958_v14, 0.0004427343 }
 0x5c6   :  { %v957_v22 = vmul.f32 %v1312_v5, %v956_v12 }
 0x5cc   :  { %v1314_v13 = vpop.eup %1313 }
 0x5cd   :  { %v945_v16 = vmul.f32 0.6931472, %v1314_v13 }
 0x5ce   :  { %v1316_v18 = vpop.eup %1315 }
 0x5cf   :  { %v951_v20 = vsel %vm950_vm1, %v948_v17, %v945_v16  ;;  %v954_v21 = vmul.f32 0.6931472, %v1316_v18 }
 0x5d0   :  { %v961_v23 = vadd.f32 %v951_v20, %v933_v19 }
 0x5d1   :  { %v960_v25 = vsel %vm959_vm2, %v957_v22, %v954_v21 }
 0x5d2   :  { %v963_v26 = vadd.f32 1e-05, %v961_v23  ;;  %v962_v27 = vadd.f32 %v960_v25, %v934_v24 }
 0x5d4   :  { %v966_v28 = vsel %vm965_vm3, %v925_v55, %v963_v26  ;;  %v964_v29 = vadd.f32 1e-05, %v962_v27 }
 0x5d5   :  { %968 = vst [vmem:[%s1803_s15] sm:$0xff] %v966_v28 }
 0x5d6   :  { %v967_v30 = vsel %vm965_vm3, %v928_v59, %v964_v29 }
 0x5d7   :  { %969 = vst [vmem:[%s1803_s15 + $0x8] sm:$0xff] %v967_v30 }
 0x5d8   :  { %974 = vsyncpa [#allocation3], 1 }
 0x5d9   :  { %975 = vsyncpa [#allocation5], 1 }
 0x5da   :  { %976 = vsyncpa [#allocation8], 1 }
 0x5db   :  { %977 = vsyncpa [#allocation11], 1 }

</bundles_post_ra>
